<compile_context>
chip_gen: v6e
topology: v6e:2x2x1
jax: 0.10.0
libtpu: 0.0.40
codegen_flags: <defaults>
</compile_context>

<pallas_src>
import functools

import jax
import jax.numpy as jnp
from jax.experimental import pallas as pl
from jax.experimental.pallas import tpu as pltpu


def _leaky_relu(x, slope=0.2):
    return jnp.where(x > 0, x, slope * x)


def _round_up(n, m):
    return ((n + m - 1) // m) * m


def encoder_kernel(x_ref, w1_ref, b1_ref, w2_ref, b2_ref, wh_ref, bh_ref,
                   out_ref):
    # FC_input + LeakyReLU (f32 accumulation on the MXU).
    h = jnp.dot(x_ref[...], w1_ref[...],
                preferred_element_type=jnp.float32) + b1_ref[...]
    h = _leaky_relu(h).astype(w2_ref.dtype)

    # FC_input2 + LeakyReLU.
    h = jnp.dot(h, w2_ref[...],
                preferred_element_type=jnp.float32) + b2_ref[...]
    h = _leaky_relu(h).astype(wh_ref.dtype)

    # Fused FC_mean / FC_var head: one lane-dense matmul + unmasked store.
    out_ref[...] = (jnp.dot(h, wh_ref[...],
                            preferred_element_type=jnp.float32)
                    + bh_ref[...]).astype(out_ref.dtype)


@functools.partial(jax.jit, static_argnames=("block_b", "compute_dtype"))
def encoder_forward(x, params, block_b=512, compute_dtype=jnp.bfloat16):
    """x: (B, input_dim) float32. params: dict of PyTorch-layout weights/biases."""
    B, input_dim = x.shape
    hidden_dim = params["W1"].shape[0]
    latent_dim = params["Wm"].shape[0]

    cdt = jnp.dtype(compute_dtype)

    # Pad every feature dim to a multiple of 128 lanes.
    in_p = _round_up(input_dim, 128)
    hid_p = _round_up(hidden_dim, 128)
    head = 2 * latent_dim
    head_p = _round_up(head, 128)

    def pad2(w, rows, cols):
        return jnp.pad(w, ((0, rows - w.shape[0]), (0, cols - w.shape[1])))

    # PyTorch (out, in) -> (in, out); fuse mean/var heads; zero-pad; cast.
    w1 = pad2(params["W1"].T, in_p, hid_p).astype(cdt)
    w2 = pad2(params["W2"].T, hid_p, hid_p).astype(cdt)
    wh = pad2(jnp.concatenate([params["Wm"].T, params["Wv"].T], axis=1),
              hid_p, head_p).astype(cdt)

    b1 = jnp.pad(params["b1"], (0, hid_p - hidden_dim))[None, :].astype(jnp.float32)
    b2 = jnp.pad(params["b2"], (0, hid_p - hidden_dim))[None, :].astype(jnp.float32)
    bh = jnp.pad(jnp.concatenate([params["bm"], params["bv"]]),
                 (0, head_p - head))[None, :].astype(jnp.float32)

    xp = jnp.pad(x, ((0, 0), (0, in_p - input_dim))).astype(cdt)

    # Batch tile: as big as requested but no bigger than the 8-aligned batch.
    block_b = max(8, min(_round_up(block_b, 8), _round_up(B, 8)))
    grid = (pl.cdiv(B, block_b),)

    # VMEM budget: double-buffered batch tiles + resident weights + scratch.
    weight_bytes = ((w1.size + w2.size + wh.size) * cdt.itemsize
                    + (b1.size + b2.size + bh.size) * 4)
    act_bytes = block_b * in_p * cdt.itemsize + block_b * head_p * 4
    scratch_bytes = 2 * block_b * hid_p * 4
    vmem_est = 2 * (weight_bytes + act_bytes) + scratch_bytes + (2 << 20)
    vmem_limit = int(min(max(vmem_est, 32 * 1024 * 1024), 64 * 1024 * 1024))

    # Advisory cost estimate for the surrounding XLA schedule.
    flops = 2 * B * (in_p * hid_p + hid_p * hid_p + hid_p * head_p)
    bytes_accessed = (B * in_p * cdt.itemsize
                      + (in_p * hid_p + hid_p * hid_p + hid_p * head_p) * cdt.itemsize
                      + (2 * hid_p + head_p) * 4
                      + B * head_p * 4)
    cost = pl.CostEstimate(flops=flops, transcendentals=0,
                           bytes_accessed=bytes_accessed)

    x_spec = pl.BlockSpec((block_b, in_p), lambda i: (i, 0))
    full = lambda shape: pl.BlockSpec(shape, lambda i: (0, 0))
    out_spec = pl.BlockSpec((block_b, head_p), lambda i: (i, 0))

    fused = pl.pallas_call(
        encoder_kernel,
        out_shape=jax.ShapeDtypeStruct((B, head_p), jnp.float32),
        grid_spec=pltpu.PrefetchScalarGridSpec(
            num_scalar_prefetch=0,
            grid=grid,
            in_specs=[
                x_spec,
                full((in_p, hid_p)), full((1, hid_p)),
                full((hid_p, hid_p)), full((1, hid_p)),
                full((hid_p, head_p)), full((1, head_p)),
            ],
            out_specs=out_spec,
        ),
        compiler_params=pltpu.CompilerParams(
            dimension_semantics=("parallel",),
            vmem_limit_bytes=vmem_limit,
        ),
        cost_estimate=cost,
    )(xp, w1, b1, w2, b2, wh, bh)

    # Split the fused lane-dense head back into mean / log_var (plain JAX).
    mean = fused[:, :latent_dim]
    log_var = fused[:, latent_dim:head]
    return mean, log_var


def init_params(key, input_dim, hidden_dim, latent_dim):
    """Deterministic init mimicking nn.Linear default (U[-1/sqrt(fan_in), +])."""
    ks = jax.random.split(key, 8)

    def linear(kw, kb, fan_in, fan_out):
        bound = 1.0 / jnp.sqrt(fan_in)
        W = jax.random.uniform(kw, (fan_out, fan_in), jnp.float32, -bound, bound)
        b = jax.random.uniform(kb, (fan_out,), jnp.float32, -bound, bound)
        return W, b

    W1, b1 = linear(ks[0], ks[1], input_dim, hidden_dim)
    W2, b2 = linear(ks[2], ks[3], hidden_dim, hidden_dim)
    Wm, bm = linear(ks[4], ks[5], hidden_dim, latent_dim)
    Wv, bv = linear(ks[6], ks[7], hidden_dim, latent_dim)
    return dict(W1=W1, b1=b1, W2=W2, b2=b2, Wm=Wm, bm=bm, Wv=Wv, bv=bv)


def encoder_ref(x, p):
    """Pure-JAX reference matching the PyTorch forward exactly."""
    h = _leaky_relu(x @ p["W1"].T + p["b1"])
    h = _leaky_relu(h @ p["W2"].T + p["b2"])
    return h @ p["Wm"].T + p["bm"], h @ p["Wv"].T + p["bv"]


if __name__ == "__main__":
    # Small shapes consistent with the module: x is (batch, input_dim).
    batch, input_dim, hidden_dim, latent_dim = 8, 64, 32, 16

    key = jax.random.PRNGKey(0)
    kx, kp = jax.random.split(key)
    x = jax.random.normal(kx, (batch, input_dim), jnp.float32)
    params = init_params(kp, input_dim, hidden_dim, latent_dim)

    mean_ref, logvar_ref = encoder_ref(x, params)

    # Default fast path: bf16 weights/activations, f32 accumulation.
    mean, log_var = encoder_forward(x, params)
    jax.block_until_ready((mean, log_var))
    assert mean.shape == (batch, latent_dim) and log_var.shape == (batch, latent_dim)
    assert jnp.allclose(mean, mean_ref, atol=5e-2, rtol=5e-2)
    assert jnp.allclose(log_var, logvar_ref, atol=5e-2, rtol=5e-2)

    # Pure-f32 path: tight numerical check; also exercises a multi-step grid
    # with a partial final batch tile (B=50, block_b=16 -> 4 grid steps).
    x2 = jax.random.normal(jax.random.PRNGKey(1), (50, input_dim), jnp.float32)
    m2, lv2 = encoder_forward(x2, params, block_b=16, compute_dtype=jnp.float32)
    jax.block_until_ready((m2, lv2))
    m2_ref, lv2_ref = encoder_ref(x2, params)
    assert jnp.allclose(m2, m2_ref, atol=1e-5, rtol=1e-5)
    assert jnp.allclose(lv2, lv2_ref, atol=1e-5, rtol=1e-5)

    print("KERNEL_OK")
</pallas_src>

<mosaic_0001>
module attributes {stable_mosaic.version = 11 : i64} {
  func.func @encoder_kernel(%arg0: i32, %arg1: memref<8x128xbf16, #tpu.memory_space<vmem>>, %arg2: memref<128x128xbf16, #tpu.memory_space<vmem>>, %arg3: memref<1x128xf32, #tpu.memory_space<vmem>>, %arg4: memref<128x128xbf16, #tpu.memory_space<vmem>>, %arg5: memref<1x128xf32, #tpu.memory_space<vmem>>, %arg6: memref<128x128xbf16, #tpu.memory_space<vmem>>, %arg7: memref<1x128xf32, #tpu.memory_space<vmem>>, %arg8: memref<8x128xf32, #tpu.memory_space<vmem>>) attributes {dimension_semantics = [#tpu.dimension_semantics<parallel>], iteration_bounds = array<i64: 1>, scalar_prefetch = 0 : i64, scratch_operands = 0 : i64, tpu.core_type = #tpu.core_type<tc>, window_params = [{transform_indices = @transform_0, window_bounds = array<i64: 8, 128>}, {pipeline_mode = #tpu.pipeline_mode<synchronous>, transform_indices = @transform_1, window_bounds = array<i64: 128, 128>}, {pipeline_mode = #tpu.pipeline_mode<synchronous>, transform_indices = @transform_2, window_bounds = array<i64: 1, 128>}, {pipeline_mode = #tpu.pipeline_mode<synchronous>, transform_indices = @transform_3, window_bounds = array<i64: 128, 128>}, {pipeline_mode = #tpu.pipeline_mode<synchronous>, transform_indices = @transform_4, window_bounds = array<i64: 1, 128>}, {pipeline_mode = #tpu.pipeline_mode<synchronous>, transform_indices = @transform_5, window_bounds = array<i64: 128, 128>}, {pipeline_mode = #tpu.pipeline_mode<synchronous>, transform_indices = @transform_6, window_bounds = array<i64: 1, 128>}, {transform_indices = @transform_7, window_bounds = array<i64: 8, 128>}]} {
    %c0 = arith.constant 0 : index
    %c0_0 = arith.constant 0 : index
    %0 = vector.load %arg1[%c0, %c0_0] : memref<8x128xbf16, #tpu.memory_space<vmem>>, vector<8x128xbf16>
    %c0_1 = arith.constant 0 : index
    %c0_2 = arith.constant 0 : index
    %1 = vector.load %arg2[%c0_1, %c0_2] : memref<128x128xbf16, #tpu.memory_space<vmem>>, vector<128x128xbf16>
    %cst = arith.constant dense<0.000000e+00> : vector<8x128xf32>
    %2 = tpu.matmul %0, %1, %cst {dimension_numbers = #tpu.dot_dimension_numbers<[1], [0], [0], [1], [0, 0, 1, 1], [], []>} : vector<8x128xbf16>, vector<128x128xbf16>, vector<8x128xf32> -> vector<8x128xf32>
    %c0_3 = arith.constant 0 : index
    %c0_4 = arith.constant 0 : index
    %3 = vector.load %arg3[%c0_3, %c0_4] : memref<1x128xf32, #tpu.memory_space<vmem>>, vector<1x128xf32>
    %4 = vector.broadcast %3 : vector<1x128xf32> to vector<8x128xf32>
    %5 = arith.addf %2, %4 : vector<8x128xf32>
    %cst_5 = arith.constant 0.000000e+00 : f32
    %6 = vector.broadcast %cst_5 : f32 to vector<8x128xf32>
    %7 = arith.cmpf ogt, %5, %6 : vector<8x128xf32>
    %cst_6 = arith.constant 2.000000e-01 : f32
    %8 = vector.broadcast %cst_6 : f32 to vector<8x128xf32>
    %9 = arith.mulf %8, %5 : vector<8x128xf32>
    %10 = arith.select %7, %5, %9 : vector<8x128xi1>, vector<8x128xf32>
    %11 = arith.truncf %10 : vector<8x128xf32> to vector<8x128xbf16>
    %c0_7 = arith.constant 0 : index
    %c0_8 = arith.constant 0 : index
    %12 = vector.load %arg4[%c0_7, %c0_8] : memref<128x128xbf16, #tpu.memory_space<vmem>>, vector<128x128xbf16>
    %cst_9 = arith.constant dense<0.000000e+00> : vector<8x128xf32>
    %13 = tpu.matmul %11, %12, %cst_9 {dimension_numbers = #tpu.dot_dimension_numbers<[1], [0], [0], [1], [0, 0, 1, 1], [], []>} : vector<8x128xbf16>, vector<128x128xbf16>, vector<8x128xf32> -> vector<8x128xf32>
    %c0_10 = arith.constant 0 : index
    %c0_11 = arith.constant 0 : index
    %14 = vector.load %arg5[%c0_10, %c0_11] : memref<1x128xf32, #tpu.memory_space<vmem>>, vector<1x128xf32>
    %15 = vector.broadcast %14 : vector<1x128xf32> to vector<8x128xf32>
    %16 = arith.addf %13, %15 : vector<8x128xf32>
    %cst_12 = arith.constant 0.000000e+00 : f32
    %17 = vector.broadcast %cst_12 : f32 to vector<8x128xf32>
    %18 = arith.cmpf ogt, %16, %17 : vector<8x128xf32>
    %cst_13 = arith.constant 2.000000e-01 : f32
    %19 = vector.broadcast %cst_13 : f32 to vector<8x128xf32>
    %20 = arith.mulf %19, %16 : vector<8x128xf32>
    %21 = arith.select %18, %16, %20 : vector<8x128xi1>, vector<8x128xf32>
    %22 = arith.truncf %21 : vector<8x128xf32> to vector<8x128xbf16>
    %c0_14 = arith.constant 0 : index
    %c0_15 = arith.constant 0 : index
    %23 = vector.load %arg6[%c0_14, %c0_15] : memref<128x128xbf16, #tpu.memory_space<vmem>>, vector<128x128xbf16>
    %cst_16 = arith.constant dense<0.000000e+00> : vector<8x128xf32>
    %24 = tpu.matmul %22, %23, %cst_16 {dimension_numbers = #tpu.dot_dimension_numbers<[1], [0], [0], [1], [0, 0, 1, 1], [], []>} : vector<8x128xbf16>, vector<128x128xbf16>, vector<8x128xf32> -> vector<8x128xf32>
    %c0_17 = arith.constant 0 : index
    %c0_18 = arith.constant 0 : index
    %25 = vector.load %arg7[%c0_17, %c0_18] : memref<1x128xf32, #tpu.memory_space<vmem>>, vector<1x128xf32>
    %26 = vector.broadcast %25 : vector<1x128xf32> to vector<8x128xf32>
    %27 = arith.addf %24, %26 : vector<8x128xf32>
    %c0_19 = arith.constant 0 : index
    %c0_20 = arith.constant 0 : index
    %28 = vector.load %arg8[%c0_19, %c0_20] : memref<8x128xf32, #tpu.memory_space<vmem>>, vector<8x128xf32>
    tpu.vector_store %arg8[%c0_19, %c0_20], %27 {strides = array<i32>} : memref<8x128xf32, #tpu.memory_space<vmem>>, vector<8x128xf32>,
    return
  }
  func.func @transform_0(%arg0: i32) -> (i32, i32) {
    %c0_i32 = arith.constant 0 : i32
    %c0_i32_0 = arith.constant 0 : i32
    return %arg0, %c0_i32 : i32, i32
  }
  func.func @transform_1(%arg0: i32) -> (i32, i32) {
    %c0_i32 = arith.constant 0 : i32
    %c0_i32_0 = arith.constant 0 : i32
    %c0_i32_1 = arith.constant 0 : i32
    return %c0_i32, %c0_i32_0 : i32, i32
  }
  func.func @transform_2(%arg0: i32) -> (i32, i32) {
    %c0_i32 = arith.constant 0 : i32
    %c0_i32_0 = arith.constant 0 : i32
    %c0_i32_1 = arith.constant 0 : i32
    return %c0_i32, %c0_i32_0 : i32, i32
  }
  func.func @transform_3(%arg0: i32) -> (i32, i32) {
    %c0_i32 = arith.constant 0 : i32
    %c0_i32_0 = arith.constant 0 : i32
    %c0_i32_1 = arith.constant 0 : i32
    return %c0_i32, %c0_i32_0 : i32, i32
  }
  func.func @transform_4(%arg0: i32) -> (i32, i32) {
    %c0_i32 = arith.constant 0 : i32
    %c0_i32_0 = arith.constant 0 : i32
    %c0_i32_1 = arith.constant 0 : i32
    return %c0_i32, %c0_i32_0 : i32, i32
  }
  func.func @transform_5(%arg0: i32) -> (i32, i32) {
    %c0_i32 = arith.constant 0 : i32
    %c0_i32_0 = arith.constant 0 : i32
    %c0_i32_1 = arith.constant 0 : i32
    return %c0_i32, %c0_i32_0 : i32, i32
  }
  func.func @transform_6(%arg0: i32) -> (i32, i32) {
    %c0_i32 = arith.constant 0 : i32
    %c0_i32_0 = arith.constant 0 : i32
    %c0_i32_1 = arith.constant 0 : i32
    return %c0_i32, %c0_i32_0 : i32, i32
  }
  func.func @transform_7(%arg0: i32) -> (i32, i32) {
    %c0_i32 = arith.constant 0 : i32
    %c0_i32_0 = arith.constant 0 : i32
    return %arg0, %c0_i32 : i32, i32
  }
}

</mosaic_0001>

<bundles_post_ra>
// kernel: encoder_forward.1
= control target key start
LH: loop header
LB: loop body
LE: loop exit
PB: predicated region body
PF: predicated region fallthrough
CT: control target
= control target key end

     0   :  { %v514_v0 = vmov 0.0   ;;  %vm515_vm0 = vmmov 0   ;;  %s673_s1 = inlined_call_operand.vmem [shape: bf16[128,128], index: 1, kind: input, shape index: {}]   ;;  %s674_s3 = inlined_call_operand.vmem [shape: bf16[128,128], index: 3, kind: input, shape index: {}]   ;;  %s675_s0 = inlined_call_operand.vmem [shape: bf16[8,128], index: 0, kind: input, shape index: {}]   ;;  %s676_s5 = inlined_call_operand.vmem [shape: bf16[128,128], index: 5, kind: input, shape index: {}]   ;;  %s677_s2 = inlined_call_operand.vmem [shape: f32[1,128], index: 2, kind: input, shape index: {}]   ;;  %s678_s4 = inlined_call_operand.vmem [shape: f32[1,128], index: 4, kind: input, shape index: {}]   ;;  %s679_s6 = inlined_call_operand.vmem [shape: f32[1,128], index: 6, kind: input, shape index: {}]   ;;  %s680_s7 = inlined_call_operand.vmem [shape: f32[8,128], index: 7, kind: output, shape index: {}]  }
   0x1   :  { %428 = vmatprep.subr.bf16.mxu0 %v514_v0  ;;  %v490_v1 = vld [vmem:[%s673_s1 + $0x38] sm:$0xff]   ;;  %444 = vmatprep.mubr.msk.bf16.mxu0 %vm515_vm0, %v514_v0  ;;  %v491_v2 = vld [vmem:[%s673_s1 + $0x30] sm:$0xff]   ;;  %v492_v3 = vld [vmem:[%s673_s1 + $0x28] sm:$0xff]  }
   0x2   :  { %448 = vmatprep.subr.bf16.mxu1 %v514_v0  ;;  %464 = vmatprep.mubr.msk.bf16.mxu1 %vm515_vm0, %v514_v0  ;;  %v498_v4 = vld [vmem:[%s674_s3 + $0x38] sm:$0xff]   ;;  %v493_v5 = vld [vmem:[%s673_s1 + $0x20] sm:$0xff]   ;;  %v499_v6 = vld [vmem:[%s674_s3 + $0x30] sm:$0xff]  }
   0x3   :  { %429 = vmatpush3.bf16.msra.mxu0 %v490_v1  ;;  %449 = vmatpush3.bf16.msra.mxu1 %v498_v4  ;;  %v494_v7 = vld [vmem:[%s673_s1 + $0x18] sm:$0xff]   ;;  %v500_v8 = vld [vmem:[%s674_s3 + $0x28] sm:$0xff]   ;;  %v495_v9 = vld [vmem:[%s673_s1 + $0x10] sm:$0xff]  }
   0x4   :  { %430 = vmatprep.subr.bf16.mxu0 %v514_v0  ;;  %450 = vmatprep.subr.bf16.mxu1 %v514_v0  ;;  %v501_v10 = vld [vmem:[%s674_s3 + $0x20] sm:$0xff]   ;;  %v496_v11 = vld [vmem:[%s673_s1 + $0x8] sm:$0xff]   ;;  %v502_v12 = vld [vmem:[%s674_s3 + $0x18] sm:$0xff]  }
   0x5   :  { %v497_v13 = vld [vmem:[%s673_s1] sm:$0xff]   ;;  %v503_v14 = vld [vmem:[%s674_s3 + $0x10] sm:$0xff]   ;;  %v504_v16 = vld [vmem:[%s674_s3 + $0x8] sm:$0xff]  }
   0x6   :  { %v27_v15 = vld [vmem:[%s675_s0] sm:$0xf]  ;;  %v506_v18 = vld [vmem:[%s676_s5 + $0x38] sm:$0xff]   ;;  %v507_v19 = vld [vmem:[%s676_s5 + $0x30] sm:$0xff]  }
   0x7   :  { %431 = vmatpush3.bf16.msra.mxu0 %v491_v2  ;;  %451 = vmatpush3.bf16.msra.mxu1 %v499_v6  ;;  %v505_v17 = vld [vmem:[%s674_s3] sm:$0xff]   ;;  %v508_v20 = vld [vmem:[%s676_s5 + $0x28] sm:$0xff]   ;;  %v510_v22 = vld [vmem:[%s676_s5 + $0x18] sm:$0xff]  }
   0x8   :  { %432 = vmatprep.subr.bf16.mxu0 %v514_v0  ;;  %452 = vmatprep.subr.bf16.mxu1 %v514_v0  ;;  %v509_v21 = vld [vmem:[%s676_s5 + $0x20] sm:$0xff]   ;;  %v511_v23 = vld [vmem:[%s676_s5 + $0x10] sm:$0xff]   ;;  %v512_v33 = vld [vmem:[%s676_s5 + $0x8] sm:$0xff]  }
   0x9   :  { %v374_v24 = vld [vmem:[%s677_s2] ss:$0 sm:$0xff] }
   0xa   :  { %v513_v34 = vld [vmem:[%s676_s5] sm:$0xff]  }
   0xb   :  { %433 = vmatpush3.bf16.msra.mxu0 %v492_v3  ;;  %453 = vmatpush3.bf16.msra.mxu1 %v500_v8  ;;  %v383_v35 = vld [vmem:[%s678_s4] ss:$0 sm:$0xff] }
   0xc   :  { %434 = vmatprep.subr.bf16.mxu0 %v514_v0  ;;  %454 = vmatprep.subr.bf16.mxu1 %v514_v0  ;;  %v392_v44 = vld [vmem:[%s679_s6] ss:$0 sm:$0xff] }
   0xf   :  { %435 = vmatpush3.bf16.msra.mxu0 %v493_v5  ;;  %455 = vmatpush3.bf16.msra.mxu1 %v501_v10 }
  0x10   :  { %436 = vmatprep.subr.bf16.mxu0 %v514_v0  ;;  %456 = vmatprep.subr.bf16.mxu1 %v514_v0 }
  0x13   :  { %437 = vmatpush3.bf16.msra.mxu0 %v494_v7  ;;  %457 = vmatpush3.bf16.msra.mxu1 %v502_v12 }
  0x14   :  { %438 = vmatprep.subr.bf16.mxu0 %v514_v0  ;;  %458 = vmatprep.subr.bf16.mxu1 %v514_v0 }
  0x17   :  { %439 = vmatpush3.bf16.msra.mxu0 %v495_v9  ;;  %459 = vmatpush3.bf16.msra.mxu1 %v503_v14 }
  0x18   :  { %440 = vmatprep.subr.bf16.mxu0 %v514_v0  ;;  %460 = vmatprep.subr.bf16.mxu1 %v514_v0 }
  0x1b   :  { %441 = vmatpush3.bf16.msra.mxu0 %v496_v11  ;;  %461 = vmatpush3.bf16.msra.mxu1 %v504_v16 }
  0x1c   :  { %442 = vmatprep.subr.bf16.mxu0 %v514_v0  ;;  %462 = vmatprep.subr.bf16.mxu1 %v514_v0 }
  0x1f   :  { %443 = vmatpush3.bf16.msra.mxu0 %v497_v13  ;;  %463 = vmatpush3.bf16.msra.mxu1 %v505_v17 }
  0x20   :  { %468 = vmatprep.subr.bf16.mxu0 %v514_v0 }
  0x22   :  { %445 = vmatmul.mubr.bf16.vlgmr.msra.gmra.mxu0 %v27_v15 }
  0x23   :  { %484 = vmatprep.mubr.msk.bf16.mxu0 %vm515_vm0, %v514_v0  ;;  %469 = vmatpush3.bf16.msra.mxu0 %v506_v18 }
  0x24   :  { %470 = vmatprep.subr.bf16.mxu0 %v514_v0 }
  0x27   :  { %471 = vmatpush3.bf16.msra.mxu0 %v507_v19 }
  0x28   :  { %472 = vmatprep.subr.bf16.mxu0 %v514_v0 }
  0x2b   :  { %473 = vmatpush3.bf16.msra.mxu0 %v508_v20 }
  0x2c   :  { %474 = vmatprep.subr.bf16.mxu0 %v514_v0 }
  0x2f   :  { %475 = vmatpush3.bf16.msra.mxu0 %v509_v21 }
  0x30   :  { %476 = vmatprep.subr.bf16.mxu0 %v514_v0 }
  0x33   :  { %477 = vmatpush3.bf16.msra.mxu0 %v510_v22 }
  0x34   :  { %478 = vmatprep.subr.bf16.mxu0 %v514_v0 }
  0x37   :  { %479 = vmatpush3.bf16.msra.mxu0 %v511_v23 }
  0x38   :  { %480 = vmatprep.subr.bf16.mxu0 %v514_v0 }
  0x3b   :  { %481 = vmatpush3.bf16.msra.mxu0 %v512_v33 }
  0x3c   :  { %482 = vmatprep.subr.bf16.mxu0 %v514_v0 }
  0x3f   :  { %483 = vmatpush3.bf16.msra.mxu0 %v513_v34 }
  0xe2   :  { %v133_v25 = vpop.f32.mrf.mxu0 }
  0xe3   :  { %v134_v26 = vadd.f32 %v374_v24, %v133_v25 }
  0xe4   :  { %v446_v27 = vpop.f32.mrf.mxu0 }
  0xe5   :  { %vm139_vm1 = vcmp.gt.f32.partialorder %v134_v26, 0.0  ;;  %v140_v28 = vmul.f32 0.2, %v134_v26 }
  0xe6   :  { %v136_v29 = vpop.f32.mrf.mxu0 }
  0xe7   :  { %v141_v30 = vsel %vm139_vm1, %v134_v26, %v140_v28 }
  0xe8   :  { %v447_v31 = vpop.f32.mrf.mxu0  ;;  %v142_v32 = vpack.c.bf16 %v141_v30, %v141_v30 }
  0xea   :  { %465 = vmatmul.mubr.bf16.vlgmr.msra.gmra.mxu1 %v142_v32 }
 0x1aa   :  { %v248_v36 = vpop.f32.mrf.mxu1 }
 0x1ab   :  { %v249_v37 = vadd.f32 %v383_v35, %v248_v36 }
 0x1ac   :  { %v466_v38 = vpop.f32.mrf.mxu1 }
 0x1ad   :  { %vm254_vm2 = vcmp.gt.f32.partialorder %v249_v37, 0.0  ;;  %v255_v39 = vmul.f32 0.2, %v249_v37 }
 0x1ae   :  { %v251_v40 = vpop.f32.mrf.mxu1 }
 0x1af   :  { %v256_v41 = vsel %vm254_vm2, %v249_v37, %v255_v39 }
 0x1b0   :  { %v257_v42 = vpack.c.bf16 %v256_v41, %v256_v41  ;;  %v467_v43 = vpop.f32.mrf.mxu1 }
 0x1b2   :  { %485 = vmatmul.mubr.bf16.vlgmr.msra.gmra.mxu0 %v257_v42 }
 0x272   :  { %v363_v45 = vpop.f32.mrf.mxu0 }
 0x273   :  { %v364_v46 = vadd.f32 %v392_v44, %v363_v45 }
 0x274   :  { %v486_v47 = vpop.f32.mrf.mxu0 }
 0x275   :  { %369 = vst [vmem:[%s680_s7] sm:$0xff] %v364_v46 }
 0x276   :  { %v366_v48 = vpop.f32.mrf.mxu0 }
 0x278   :  { %v487_v49 = vpop.f32.mrf.mxu0 }

</bundles_post_ra>
